<compile_context>
chip_gen: v5e
topology: v5e:2x2
jax: 0.10.0
libtpu: 0.0.40
codegen_flags: <defaults>
</compile_context>

<pallas_src>
import functools

import jax
import jax.numpy as jnp
from jax.experimental import pallas as pl
from jax.experimental.pallas import tpu as pltpu

_LANE = 128


def _round_up(a, m):
    return ((a + m - 1) // m) * m


def _vmem_capacity_bytes():
    try:
        return int(pltpu.get_tpu_info().vmem_capacity_bytes)
    except Exception:
        return 64 * 1024 * 1024  # conservative default (v7x per-core VMEM)


# ---------------------------------------------------------------------------
# Fused single-pass kernel (whole sample resident in VMEM).
#   x_ref: (1, C, HW)   gamma_ref/beta_ref: (C, 1) f32   o_ref: (1, C, HW)
# ---------------------------------------------------------------------------
def _fused_kernel(x_ref, gamma_ref, beta_ref, o_ref, *, n, eps):
    xf = x_ref[0].astype(jnp.float32)                                 # (C, HW)
    total = jnp.sum(jnp.sum(xf, axis=1, keepdims=True), axis=0, keepdims=True)
    mean = total / n                                                  # (1, 1)
    centered = xf - mean                                              # exact two-pass
    ssq = jnp.sum(jnp.sum(centered * centered, axis=1, keepdims=True),
                  axis=0, keepdims=True)
    var = ssq / max(n - 1.0, 1.0)                                     # unbiased (Bessel)
    std = jnp.sqrt(var)
    rstd = 1.0 / (std + eps)                                          # eps on std
    scale = gamma_ref[...] * rstd                                     # (C, 1) f32
    o_ref[0] = (centered * scale + beta_ref[...]).astype(o_ref.dtype)


# ---------------------------------------------------------------------------
# Fallback pass 1: per-(sample, split) sum and sum of squares.
#   x_ref: (1, C, hw_tile)   sum_ref/sumsq_ref: (1, 1)   acc_*: VMEM (C, 1) f32
# Tail tiles are masked with an iota lane mask (input is NOT padded).
# ---------------------------------------------------------------------------
def _stats_kernel(x_ref, sum_ref, sumsq_ref, acc_s, acc_ss, *, hw, hw_tile):
    s = pl.program_id(1)
    t = pl.program_id(2)
    per = pl.num_programs(2)

    @pl.when(t == 0)
    def _init():
        acc_s[...] = jnp.zeros_like(acc_s)
        acc_ss[...] = jnp.zeros_like(acc_ss)

    xf = x_ref[0].astype(jnp.float32)                                 # (C, hw_tile)
    start = (s * per + t) * hw_tile
    lane = jax.lax.broadcasted_iota(jnp.int32, xf.shape, 1)
    xm = jnp.where(start + lane < hw, xf, 0.0)
    # Per step: lane reduce + VPU accumulate only; the cross-sublane (XLU)
    # reduce happens once, in the epilogue.
    acc_s[...] += jnp.sum(xm, axis=1, keepdims=True)                  # (C, 1)
    acc_ss[...] += jnp.sum(xm * xm, axis=1, keepdims=True)            # (C, 1)

    @pl.when(t == per - 1)
    def _finish():
        sum_ref[...] = jnp.sum(acc_s[...], axis=0, keepdims=True)     # (1, 1)
        sumsq_ref[...] = jnp.sum(acc_ss[...], axis=0, keepdims=True)  # (1, 1)


# ---------------------------------------------------------------------------
# Fallback pass 2: elementwise apply; scale/shift derived in-kernel from the
# tiny stats inputs, FMA done in f32, cast only on the store.
#   sums/sumsqs: (n_split, 1)   gamma/beta: (C, 1)   x/o: (1, C, hw_tile)
# ---------------------------------------------------------------------------
def _apply_kernel(sums_ref, sumsqs_ref, gamma_ref, beta_ref, x_ref, o_ref, *,
                  n, eps):
    s = jnp.sum(sums_ref[...], keepdims=True)                         # combine splits
    ss = jnp.sum(sumsqs_ref[...], keepdims=True)
    mean = s / n
    # TODO(synk): E[x^2]-mean^2 in f32 can cancel for very large N with a big
    # DC offset; the fused path (exact centered variance) covers typical sizes.
    var = (ss - s * mean) / max(n - 1.0, 1.0)
    std = jnp.sqrt(jnp.maximum(var, 0.0))
    rstd = 1.0 / (std + eps)
    scale = gamma_ref[...] * rstd                                     # (C, 1)
    shift = beta_ref[...] - mean * scale                              # (C, 1)
    o_ref[0] = (x_ref[0].astype(jnp.float32) * scale + shift).astype(o_ref.dtype)


def layer_norm(x, gamma=None, beta=None, eps=1e-5, *, force_two_pass=False,
               _max_block_bytes=None):
    """x: (B, C, *spatial); gamma/beta: (C,) or None (=> affine=False)."""
    orig_shape = x.shape
    B, C = orig_shape[0], orig_shape[1]
    HW = 1
    for d in orig_shape[2:]:
        HW *= d
    N = C * HW
    itemsize = x.dtype.itemsize
    x3 = x.reshape(B, C, HW)

    if gamma is None:
        gamma = jnp.ones((C,), jnp.float32)
    if beta is None:
        beta = jnp.zeros((C,), jnp.float32)
    gamma2 = gamma.astype(jnp.float32).reshape(C, 1)
    beta2 = beta.astype(jnp.float32).reshape(C, 1)

    # Generation-aware VMEM budgets: v5e/v6e have 128 MiB VMEM, v7x only 64.
    big_vmem = _vmem_capacity_bytes() >= 96 * 1024 * 1024
    if big_vmem:
        vmem_limit = 64 * 1024 * 1024
        stats_block_bytes = 12 * 1024 * 1024
        apply_block_bytes = 8 * 1024 * 1024
    else:
        vmem_limit = 44 * 1024 * 1024
        stats_block_bytes = 8 * 1024 * 1024
        apply_block_bytes = 4 * 1024 * 1024
    if _max_block_bytes is not None:             # test hook: force small tiles
        stats_block_bytes = min(stats_block_bytes, _max_block_bytes)
        apply_block_bytes = min(apply_block_bytes, _max_block_bytes)

    # ---- fused single-pass path (x read once, written once) ----------------
    sample_bytes = N * itemsize
    fused_vmem_est = 4 * sample_bytes + 2 * N * 4 + 4 * C * 4   # db in/out + f32 temps
    if not force_two_pass and fused_vmem_est <= int(0.85 * vmem_limit):
        out = pl.pallas_call(
            functools.partial(_fused_kernel, n=float(N), eps=float(eps)),
            out_shape=jax.ShapeDtypeStruct((B, C, HW), x.dtype),
            grid_spec=pltpu.PrefetchScalarGridSpec(
                num_scalar_prefetch=0,
                grid=(B,),
                in_specs=[pl.BlockSpec((1, C, HW), lambda b: (b, 0, 0)),
                          pl.BlockSpec((C, 1), lambda b: (0, 0)),
                          pl.BlockSpec((C, 1), lambda b: (0, 0))],
                out_specs=pl.BlockSpec((1, C, HW), lambda b: (b, 0, 0))),
            compiler_params=pltpu.CompilerParams(
                dimension_semantics=("parallel",),
                vmem_limit_bytes=vmem_limit),
            cost_estimate=pl.CostEstimate(
                flops=7 * B * N, transcendentals=0,
                bytes_accessed=2 * B * N * itemsize),
        )(x3, gamma2, beta2)
        return out.reshape(orig_shape)

    # ---- two-pass fallback (sample does not fit in VMEM) --------------------
    # TODO(synk): for C < 8 a (B*C, HW) layout would restore full sublane
    # density in this path (per-row stats segment-summed back to B in XLA).
    def _tile(block_bytes):
        t = max(_LANE, (block_bytes // max(C * itemsize, 1)) // _LANE * _LANE)
        return min(t, _round_up(HW, _LANE))

    hw_tile_s = _tile(stats_block_bytes)
    n_t = pl.cdiv(HW, hw_tile_s)
    # Split the B==1 reduction into 2 parallel grid slices so both v7x
    # TensorCores participate; harmless no-op on single-core chips.
    n_split = 2 if (B == 1 and n_t >= 2 and n_t % 2 == 0) else 1
    per = n_t // n_split

    sums, sumsqs = pl.pallas_call(
        functools.partial(_stats_kernel, hw=HW, hw_tile=hw_tile_s),
        out_shape=(jax.ShapeDtypeStruct((B * n_split, 1), jnp.float32),
                   jax.ShapeDtypeStruct((B * n_split, 1), jnp.float32)),
        grid_spec=pltpu.PrefetchScalarGridSpec(
            num_scalar_prefetch=0,
            grid=(B, n_split, per),
            in_specs=[pl.BlockSpec((1, C, hw_tile_s),
                                   lambda b, s, t, p=per: (b, 0, s * p + t))],
            out_specs=[pl.BlockSpec((1, 1),
                                    lambda b, s, t, ns=n_split: (b * ns + s, 0)),
                       pl.BlockSpec((1, 1),
                                    lambda b, s, t, ns=n_split: (b * ns + s, 0))],
            scratch_shapes=[pltpu.VMEM((C, 1), jnp.float32),
                            pltpu.VMEM((C, 1), jnp.float32)]),
        compiler_params=pltpu.CompilerParams(
            dimension_semantics=("parallel", "parallel", "arbitrary"),
            vmem_limit_bytes=vmem_limit),
        cost_estimate=pl.CostEstimate(
            flops=3 * B * N, transcendentals=0,
            bytes_accessed=B * N * itemsize),
    )(x3)

    hw_tile_a = _tile(apply_block_bytes)
    n_ta = pl.cdiv(HW, hw_tile_a)

    out = pl.pallas_call(
        functools.partial(_apply_kernel, n=float(N), eps=float(eps)),
        out_shape=jax.ShapeDtypeStruct((B, C, HW), x.dtype),
        grid_spec=pltpu.PrefetchScalarGridSpec(
            num_scalar_prefetch=0,
            grid=(B, n_ta),
            in_specs=[pl.BlockSpec((n_split, 1), lambda b, t: (b, 0)),
                      pl.BlockSpec((n_split, 1), lambda b, t: (b, 0)),
                      pl.BlockSpec((C, 1), lambda b, t: (0, 0)),
                      pl.BlockSpec((C, 1), lambda b, t: (0, 0)),
                      pl.BlockSpec((1, C, hw_tile_a), lambda b, t: (b, 0, t))],
            out_specs=pl.BlockSpec((1, C, hw_tile_a), lambda b, t: (b, 0, t))),
        compiler_params=pltpu.CompilerParams(
            dimension_semantics=("parallel", "parallel"),
            vmem_limit_bytes=vmem_limit),
        cost_estimate=pl.CostEstimate(
            flops=2 * B * N, transcendentals=0,
            bytes_accessed=2 * B * N * itemsize),
    )(sums, sumsqs, gamma2, beta2, x3)

    return out.reshape(orig_shape)


def _reference(x, gamma, beta, eps=1e-5):
    # Pure-JAX replica of the PyTorch forward (unbiased std, eps on std).
    B = x.shape[0]
    xf = x.reshape(B, -1).astype(jnp.float32)
    mean = jnp.mean(xf, axis=1)
    var = jnp.sum((xf - mean[:, None]) ** 2, axis=1) / (xf.shape[1] - 1)
    std = jnp.sqrt(var)
    bshape = (B,) + (1,) * (x.ndim - 1)
    xn = (x - mean.reshape(bshape)) / (std.reshape(bshape) + eps)
    gshape = (1, -1) + (1,) * (x.ndim - 2)
    return xn * gamma.reshape(gshape) + beta.reshape(gshape)


if __name__ == "__main__":
    key = jax.random.PRNGKey(0)
    k_x, k_g, k_x2 = jax.random.split(key, 3)

    B, C, H, W = 2, 4, 16, 16
    x = jax.random.normal(k_x, (B, C, H, W), dtype=jnp.float32)
    gamma = jax.random.uniform(k_g, (C,), dtype=jnp.float32)   # Tensor.uniform_()
    beta = jnp.zeros((C,), dtype=jnp.float32)                  # torch.zeros

    # Primary (fused single-pass) path.
    out = jax.block_until_ready(layer_norm(x, gamma, beta, eps=1e-5))
    ref = _reference(x, gamma, beta, eps=1e-5)
    assert out.shape == (B, C, H, W)
    assert jnp.allclose(out, ref, atol=1e-4, rtol=1e-4), "fused path mismatch"

    # Two-pass fallback with a tail tile (HW % 128 != 0), small forced tiles.
    x2 = jax.random.normal(k_x2, (2, 4, 16, 19), dtype=jnp.float32)
    out2 = jax.block_until_ready(
        layer_norm(x2, gamma, beta, eps=1e-5, force_two_pass=True,
                   _max_block_bytes=C * _LANE * 4))
    ref2 = _reference(x2, gamma, beta, eps=1e-5)
    assert jnp.allclose(out2, ref2, atol=1e-4, rtol=1e-4), "two-pass mismatch"

    # B==1 split-reduction path (two partial sums combined in the apply).
    x3 = jax.random.normal(k_x, (1, 4, 16, 32), dtype=jnp.float32)
    out3 = jax.block_until_ready(
        layer_norm(x3, gamma, beta, eps=1e-5, force_two_pass=True,
                   _max_block_bytes=C * _LANE * 4))
    ref3 = _reference(x3, gamma, beta, eps=1e-5)
    assert jnp.allclose(out3, ref3, atol=1e-4, rtol=1e-4), "split path mismatch"

    print("KERNEL_OK")
</pallas_src>

<mosaic_0001>
module attributes {stable_mosaic.version = 11 : i64} {
  func.func @_fused_kernel(%arg0: i32, %arg1: memref<1x4x256xf32, #tpu.memory_space<vmem>>, %arg2: memref<4x1xf32, #tpu.memory_space<vmem>>, %arg3: memref<4x1xf32, #tpu.memory_space<vmem>>, %arg4: memref<1x4x256xf32, #tpu.memory_space<vmem>>) attributes {dimension_semantics = [#tpu.dimension_semantics<parallel>], iteration_bounds = array<i64: 2>, scalar_prefetch = 0 : i64, scratch_operands = 0 : i64, tpu.core_type = #tpu.core_type<tc>, window_params = [{transform_indices = @transform_0, window_bounds = array<i64: 1, 4, 256>}, {pipeline_mode = #tpu.pipeline_mode<synchronous>, transform_indices = @transform_1, window_bounds = array<i64: 4, 1>}, {pipeline_mode = #tpu.pipeline_mode<synchronous>, transform_indices = @transform_2, window_bounds = array<i64: 4, 1>}, {transform_indices = @transform_3, window_bounds = array<i64: 1, 4, 256>}]} {
    %c0 = arith.constant 0 : index
    %c0_0 = arith.constant 0 : index
    %c0_1 = arith.constant 0 : index
    %0 = vector.load %arg1[%c0, %c0_0, %c0_1] : memref<1x4x256xf32, #tpu.memory_space<vmem>>, vector<1x4x256xf32>
    %1 = vector.shape_cast %0 : vector<1x4x256xf32> to vector<4x256xf32>
    %cst = arith.constant dense<0.000000e+00> : vector<4xf32>
    %2 = vector.multi_reduction <add>, %1, %cst [1] : vector<4x256xf32> to vector<4xf32>
    %3 = vector.shape_cast %2 : vector<4xf32> to vector<4x1xf32>
    %cst_2 = arith.constant dense<0.000000e+00> : vector<1xf32>
    %4 = vector.multi_reduction <add>, %3, %cst_2 [0] : vector<4x1xf32> to vector<1xf32>
    %5 = vector.shape_cast %4 : vector<1xf32> to vector<1x1xf32>
    %cst_3 = arith.constant 1.024000e+03 : f32
    %6 = vector.broadcast %cst_3 : f32 to vector<1x1xf32>
    %7 = arith.divf %5, %6 : vector<1x1xf32>
    %8 = vector.broadcast %7 : vector<1x1xf32> to vector<4x256xf32>
    %9 = arith.subf %1, %8 : vector<4x256xf32>
    %10 = arith.mulf %9, %9 : vector<4x256xf32>
    %cst_4 = arith.constant dense<0.000000e+00> : vector<4xf32>
    %11 = vector.multi_reduction <add>, %10, %cst_4 [1] : vector<4x256xf32> to vector<4xf32>
    %12 = vector.shape_cast %11 : vector<4xf32> to vector<4x1xf32>
    %cst_5 = arith.constant dense<0.000000e+00> : vector<1xf32>
    %13 = vector.multi_reduction <add>, %12, %cst_5 [0] : vector<4x1xf32> to vector<1xf32>
    %14 = vector.shape_cast %13 : vector<1xf32> to vector<1x1xf32>
    %cst_6 = arith.constant 1.023000e+03 : f32
    %15 = vector.broadcast %cst_6 : f32 to vector<1x1xf32>
    %16 = arith.divf %14, %15 : vector<1x1xf32>
    %17 = math.sqrt %16 : vector<1x1xf32>
    %cst_7 = arith.constant 9.99999974E-6 : f32
    %18 = vector.broadcast %cst_7 : f32 to vector<1x1xf32>
    %19 = arith.addf %17, %18 : vector<1x1xf32>
    %cst_8 = arith.constant 1.000000e+00 : f32
    %20 = vector.broadcast %cst_8 : f32 to vector<1x1xf32>
    %21 = arith.divf %20, %19 : vector<1x1xf32>
    %c0_9 = arith.constant 0 : index
    %c0_10 = arith.constant 0 : index
    %22 = vector.load %arg2[%c0_9, %c0_10] : memref<4x1xf32, #tpu.memory_space<vmem>>, vector<4x1xf32>
    %23 = vector.broadcast %21 : vector<1x1xf32> to vector<4x1xf32>
    %24 = arith.mulf %22, %23 : vector<4x1xf32>
    %25 = vector.broadcast %24 : vector<4x1xf32> to vector<4x256xf32>
    %26 = arith.mulf %9, %25 : vector<4x256xf32>
    %c0_11 = arith.constant 0 : index
    %c0_12 = arith.constant 0 : index
    %27 = vector.load %arg3[%c0_11, %c0_12] : memref<4x1xf32, #tpu.memory_space<vmem>>, vector<4x1xf32>
    %28 = vector.broadcast %27 : vector<4x1xf32> to vector<4x256xf32>
    %29 = arith.addf %26, %28 : vector<4x256xf32>
    %c0_13 = arith.constant 0 : index
    %c0_14 = arith.constant 0 : index
    %c0_15 = arith.constant 0 : index
    %30 = vector.load %arg4[%c0_13, %c0_14, %c0_15] : memref<1x4x256xf32, #tpu.memory_space<vmem>>, vector<1x4x256xf32>
    %31 = vector.shape_cast %30 : vector<1x4x256xf32> to vector<4x256xf32>
    %32 = vector.shape_cast %29 : vector<4x256xf32> to vector<1x4x256xf32>
    tpu.vector_store %arg4[%c0_13, %c0_14, %c0_15], %32 {strides = array<i32>} : memref<1x4x256xf32, #tpu.memory_space<vmem>>, vector<1x4x256xf32>,
    return
  }
  func.func @transform_0(%arg0: i32) -> (i32, i32, i32) {
    %c0_i32 = arith.constant 0 : i32
    %c0_i32_0 = arith.constant 0 : i32
    %c0_i32_1 = arith.constant 0 : i32
    return %arg0, %c0_i32, %c0_i32_0 : i32, i32, i32
  }
  func.func @transform_1(%arg0: i32) -> (i32, i32) {
    %c0_i32 = arith.constant 0 : i32
    %c0_i32_0 = arith.constant 0 : i32
    %c0_i32_1 = arith.constant 0 : i32
    return %c0_i32, %c0_i32_0 : i32, i32
  }
  func.func @transform_2(%arg0: i32) -> (i32, i32) {
    %c0_i32 = arith.constant 0 : i32
    %c0_i32_0 = arith.constant 0 : i32
    %c0_i32_1 = arith.constant 0 : i32
    return %c0_i32, %c0_i32_0 : i32, i32
  }
  func.func @transform_3(%arg0: i32) -> (i32, i32, i32) {
    %c0_i32 = arith.constant 0 : i32
    %c0_i32_0 = arith.constant 0 : i32
    %c0_i32_1 = arith.constant 0 : i32
    return %arg0, %c0_i32, %c0_i32_0 : i32, i32, i32
  }
}

</mosaic_0001>

<bundles_post_ra>
// kernel: tpu_custom_call.1
= control target key start
LH: loop header
LB: loop body
LE: loop exit
PB: predicated region body
PF: predicated region fallthrough
CT: control target
= control target key end

     0   :  { %8 = vsyncpa [#allocation3], 0  ;;  %s730_s0 = inlined_call_operand.hbm [shape: f32[2,4,256], index: 0, kind: input, shape index: {}]   ;;  %s731_s1 = inlined_call_operand.vmem [shape: f32[4,1], index: 1, kind: input, shape index: {}]   ;;  %s732_s2 = inlined_call_operand.vmem [shape: f32[4,1], index: 2, kind: input, shape index: {}]   ;;  %s733_s3 = inlined_call_operand.hbm [shape: f32[2,4,256], index: 3, kind: output, shape index: {}]  }
   0x1   :  { %10 = vsyncpa [#allocation3 + $0x1], 0 }
   0x2   :  { %11 = vsyncpa [#allocation4], 0 }
   0x3   :  { %13 = vsyncpa [#allocation4 + $0x1], 0  ;;  %s582_s12 = smov 0   ;;  %s584_s13 = smov 0  }
   0x4   :  { %s586_s14 = smov 0   ;;  %s588_s15 = smov 0  }
   0x5 LB: > { %s603_s16 = sadd.s32 4294967295, %s556_s15   ;;  %s384_s17 = sadd.s32 4294967294, %s556_s15   ;;  %s556_s15 = sphi %s588_s15, %s743_s15   ;;  %s552_s14 = sphi %s586_s14, %s742_s14   ;;  %s548_s13 = sphi %s584_s13, %s741_s13   ;;  %s544_s12 = sphi %s582_s12, %s740_s12  }
   0x6   : > { %s607_s18 = sadd.s32 1, %s556_s15   ;;  %s26_s19 = sadd.s32 1, %s552_s14 }
   0x7   : > { %s23_s20 = ssub.s32 %s556_s15, %s607_s18  ;;  %p33_p0 = scmp.ne.s32.totalorder %s552_s14, %s548_s13 }
   0x8   : > { %p24_p1 = scmp.eq.s32.totalorder %s23_s20, 0  ;;  %p34_p2 = scmp.eq.s32.totalorder %s556_s15, 0 }
   0x9   : > { %p39_p3 = scmp.ne.s32.totalorder %s548_s13, %s544_s12  ;;  %p40_p4 = scmp.eq.s32.totalorder %s603_s16, 0 }
   0xa   : > { %s619_s21 = scalar_select %p24_p1, %s552_s14, %s26_s19  }
   0xb   : > { %p621_p5 = por %p34_p2, %p33_p0  ;;  %p625_p6 = por %p40_p4, %p39_p3 }
   0xc   : > { %p105_p7 = scmp.eq.s32.totalorder %s603_s16, 1  ;;  %p111_p8 = scmp.eq.s32.totalorder %s384_s17, 1 }
   0xd   : > { %p412_p10 = scmp.lt.s32.totalorder %s556_s15, 2  ;;  %s137_s26 = sand.u32 1, %s552_s14  }
   0xe   : > { %p632_p11 = por %p105_p7, %p33_p0  ;;  %p636_p12 = por %p111_p8, %p39_p3 }
   0xf   : > { %s398_s27 = sshll.u32 %s556_s15, 3  ;;  %s387_s28 = sshll.u32 %s137_s26, 3 }
  0x10   : > { %s146_s4 = scalar_lea.hbm %s730_s0, %s398_s27  ;;  %s141_s6 = scalar_lea.vmem [#allocation2], %s387_s28 }
  0x11   : > { %s148_s5 = sshll.u32 %s146_s4, 4  ;;  %s150_s7 = sshll.u32 %s141_s6, 4  ;;  %s149_s5 = int_to_ptr.hbm [resolvable:$true] %s148_s5  ;;  %s151_s7 = int_to_ptr.vmem [resolvable:$true] %s150_s7 }
  0x12   : > { %p647_p13 = pnand %p412_p10, %p621_p5  ;;  %p390_p0 = scmp.ge.s32.totalorder %s556_s15, 1 }
  0x13   : > { %p155_p1 = scmp.lt.s32.totalorder %s556_s15, 3  ;;  %s138_s9 = scalar_lea.sflag [#allocation3], %s137_s26 }
  0x14   : > { %s460_s10 = sshra.s32 %s149_s5, 4  ;;  %p464_p3 = pneg %p647_p13  ;;  %s461_s10 = int_to_ptr.hbm [resolvable:$true] %s460_s10 }
  0x15   : > { %s462_s11 = scalar_lea.hbm %s461_s10, 8  ;;  %s467_s20 = scalar_lea.hbm %s730_s0, 16 }
  0x16   : > { %p463_p2 = scmp.ne.s32.totalorder %s461_s10, %s462_s11  ;;  %p468_p5 = scmp.lt.s32.totalorder %s461_s10, %s730_s0 }
  0x17   : > { %p469_p8 = scmp.lt.s32.totalorder %s467_s20, %s462_s11 }
  0x18   : > { %p465_p4 = pnand %p464_p3, %p463_p2 }
  0x19   : > { %p470_p10 = por %p469_p8, %p468_p5 }
  0x1a   : > { %p466_p7 = pneg %p465_p4 }
  0x1c   : > { %p471_p9 = pnand %p470_p10, %p466_p7 }
  0x1e   : > { %474 = shalt.err (!%p471_p9)
}
  0x1f   : > { %407 = dma.hbm_to_vmem [thread:$0]  (!%p647_p13), %s149_s5, 128, %s151_s7, %s138_s9  }
  0x20   : > { %p156_p2 = pnand %p390_p0, %p155_p1 }
  0x21   : > { %s668_s26 = sand.u32 (!%p156_p2), 1, %s548_s13  }
  0x22   : > { %159 = sbr.rel (%p156_p2) target bundleno = 501 (0x1f5), region = 32  ;;  %s391_s28 = sshll.u32 (!%p156_p2), %s668_s26, 3 }
  0x23   : > { %s162_s29 = scalar_lea.sflag (!%p156_p2), [#allocation3], %s668_s26  ;;  %s165_s30 = scalar_lea.vmem (!%p156_p2), [#allocation2], %s391_s28 }
  0x27   : > { %535 = dma.done.wait (%p625_p6), %s162_s29, 128  }
  0x28   : > { %537 = vsyncadd (%p625_p6), %s162_s29, 4294967168  ;;  %v189_v0 = vld [vmem:[%s165_s30] sm:$0xff]  ;;  %vm196_vm0 = vcmask 1043456   ;;  %v558_v6 = vmov 1024.0   ;;  %v559_v29 = vmov 0   ;;  %v560_v30 = vmov 1023.0  }
  0x29   : > { %191 = vst [vmem:[#allocation1] ss:$2 sm:$0xff] %v189_v0  ;;  %452 = vrcp.f32 %v558_v6  ;;  %450 = vset.pattern.permute.xlu1 %v559_v29  ;;  %451 = vset.pattern.permute.xlu0 %v559_v29  ;;  %v561_v6 = vmov 839922192   ;;  %s399_s7 = sshll.u32 %s603_s16, 3  ;;  %s188_s11 = scalar_lea.vmem [#allocation5], %s391_s28 }
  0x2a   : > { %454 = vrcp.f32 %v560_v30  ;;  %s309_s10 = scalar_lea.hbm %s733_s3, %s399_s7  ;;  %s311_s17 = sshll.u32 %s188_s11, 4  ;;  %s312_s17 = int_to_ptr.vmem [resolvable:$true] %s311_s17 }
  0x2b   : > { %s313_s19 = sshll.u32 %s309_s10, 4  ;;  %s298_s20 = scalar_lea.sflag [#allocation4], %s668_s26  ;;  %s314_s19 = int_to_ptr.hbm [resolvable:$true] %s313_s19 }
  0x2c   : > { %s504_s16 = sshra.s32 %s314_s19, 4  ;;  %s510_s28 = scalar_lea.hbm %s733_s3, 16  ;;  %s505_s16 = int_to_ptr.hbm [resolvable:$true] %s504_s16 }
  0x2d   : > { %s506_s22 = scalar_lea.hbm %s505_s16, 8  ;;  %p511_p0 = scmp.lt.s32.totalorder %s505_s16, %s733_s3 }
  0x2e   : > { %p507_p6 = scmp.ne.s32.totalorder %s505_s16, %s506_s22  ;;  %p512_p1 = scmp.lt.s32.totalorder %s510_s28, %s506_s22 }
  0x2f   : > { %v453_v7 = vpop.eup %452 }
  0x30   : > { %v192_v1 = vld.sshfl [vmem:[#allocation1] sm:$0xff pattern:$0x75316420]  ;;  %v193_v2 = vld.sshfl [vmem:[#allocation1 + $0x8] sm:$0xff pattern:$0x75316420]  ;;  %vm214_vm1 = vweird.f32 %v453_v7  ;;  %v455_v31 = vpop.eup %454  ;;  %p508_p9 = pnand %p507_p6, %p632_p11  ;;  %p513_p3 = por %p512_p1, %p511_p0 }
  0x31   : > { %v197_v3 = vsel %vm196_vm0, %v192_v1, 0.0  ;;  %v198_v4 = vsel %vm196_vm0, %v193_v2, 0.0  ;;  %v210_v8 = vmul.f32 1024.0, %v453_v7  ;;  %v238_v32 = vmul.f32 1023.0, %v455_v31  ;;  %v273_v1 = vld [vmem:[%s731_s1] sm:$0xf] }
  0x32   : > { %v199_v5 = vadd.f32 %v198_v4, %v197_v3  ;;  %vm242_vm2 = vweird.f32 %v455_v31  ;;  %p509_p13 = pneg %p508_p9 }
  0x33   : > { %v211_v9 = vsub.f32 1.0, %v210_v8  ;;  %v239_v33 = vsub.f32 1.0, %v238_v32 }
  0x34   : > { %200 = vadd.xlane.f32.xlu0 %v199_v5  ;;  %v285_v5 = vld [vmem:[%s732_s2] sm:$0xf]  ;;  %p514_p4 = pnand %p513_p3, %p509_p13 }
  0x35   : > { %v212_v13 = vmul.f32 %v453_v7, %v211_v9  ;;  %v240_v37 = vmul.f32 %v455_v31, %v239_v33 }
  0x37   : > { %v213_v16 = vadd.f32 %v453_v7, %v212_v13  ;;  %v241_v40 = vadd.f32 %v455_v31, %v240_v37 }
  0x39   : > { %v215_v19 = vsel %vm214_vm1, %v453_v7, %v213_v16  ;;  %v243_v43 = vsel %vm242_vm2, %v455_v31, %v241_v40  ;;  %v280_v7 = vunpack.c.l.s4 %v561_v6 }
  0x3b   : > { %v281_v9 = vunpack.c.0.s8 %v280_v7 }
  0xa7   : > { %v201_v10 = vpop.xlane.xlu0 %200 }
  0xa8   : > { %v202_v11 = vsel %vm196_vm0, %v201_v10, 0.0 }
  0xa9   : > { %v203_v12 = vrot.slane %v202_v11, 4 }
  0xab   : > { %v204_v14 = vadd.f32 %v203_v12, %v202_v11 }
  0xad   : > { %v205_v15 = vrot.slane %v204_v14, 2 }
  0xaf   : > { %v206_v17 = vadd.f32 %v205_v15, %v204_v14 }
  0xb1   : > { %v207_v18 = vrot.slane %v206_v17, 1 }
  0xb3   : > { %v208_v20 = vadd.f32 %v207_v18, %v206_v17 }
  0xb5   : > { %v216_v21 = vmul.f32 %v215_v19, %v208_v20 }
  0xb7   : > { %v681_v22 = vsub.f32 %v189_v0, %v216_v21 }
  0xb9   : > { %v218_v23 = vmul.f32 %v681_v22, %v681_v22 }
  0xbb   : > { %220 = vst [vmem:[#allocation1] ss:$2 sm:$0xff] %v218_v23 }
  0xc2   : > { %v221_v24 = vld.sshfl [vmem:[#allocation1] sm:$0xff pattern:$0x75316420]  ;;  %v222_v25 = vld.sshfl [vmem:[#allocation1 + $0x8] sm:$0xff pattern:$0x75316420] }
  0xc3   : > { %v225_v26 = vsel %vm196_vm0, %v221_v24, 0.0  ;;  %v226_v27 = vsel %vm196_vm0, %v222_v25, 0.0 }
  0xc4   : > { %v227_v28 = vadd.f32 %v226_v27, %v225_v26 }
  0xc6   : > { %228 = vadd.xlane.f32.xlu0 %v227_v28 }
 0x139   : > { %v229_v34 = vpop.xlane.xlu0 %228 }
 0x13a   : > { %v230_v35 = vsel %vm196_vm0, %v229_v34, 0.0 }
 0x13b   : > { %v231_v36 = vrot.slane %v230_v35, 4 }
 0x13d   : > { %v232_v38 = vadd.f32 %v231_v36, %v230_v35 }
 0x13f   : > { %v233_v39 = vrot.slane %v232_v38, 2 }
 0x141   : > { %v234_v41 = vadd.f32 %v233_v39, %v232_v38 }
 0x143   : > { %v235_v42 = vrot.slane %v234_v41, 1 }
 0x145   : > { %v236_v44 = vadd.f32 %v235_v42, %v234_v41 }
 0x147   : > { %v244_v45 = vmul.f32 %v243_v43, %v236_v44 }
 0x149   : > { %456 = vrsqrt.f32 %v244_v45  ;;  %vm252_vm3 = vcmp.eq.f32.partialorder %v244_v45, inf  ;;  %v255_v53 = vand.u32 2147483648, %v244_v45  ;;  %vm254_vm4 = vcmp.eq.f32.partialorder %v244_v45, 0.0 }
 0x14f   : > { %v457_v46 = vpop.eup %456 }
 0x150   : > { %v246_v47 = vmul.f32 %v457_v46, %v244_v45 }
 0x152   : > { %v247_v48 = vmul.f32 %v457_v46, %v246_v47 }
 0x154   : > { %v248_v49 = vmul.f32 0.5, %v247_v48 }
 0x156   : > { %v249_v50 = vsub.f32 1.5, %v248_v49 }
 0x158   : > { %v250_v51 = vmul.f32 %v457_v46, %v249_v50 }
 0x15a   : > { %v251_v52 = vmul.f32 %v250_v51, %v244_v45 }
 0x15c   : > { %v253_v54 = vsel %vm252_vm3, %v244_v45, %v251_v52 }
 0x15d   : > { %v256_v55 = vsel %vm254_vm4, %v255_v53, %v253_v54 }
 0x15e   : > { %v257_v56 = vadd.f32 1e-05, %v256_v55 }
 0x160   : > { %458 = vrcp.f32 %v257_v56  ;;  %v269_v60 = vand.u32 2147483648, %v257_v56  ;;  %v267_v62 = vand.u32 2147483647, %v257_v56  ;;  %vm263_vm6 = vweird.f32 %v257_v56 }
 0x162   : > { %v270_v0 = vor.u32 1.1754944e-38, %v269_v60  ;;  %vm268_vm8 = vcmp.eq.f32.partialorder %v267_v62, 8.507059e+37 }
 0x166   : > { %v459_v57 = vpop.eup %458 }
 0x167   : > { %v259_v58 = vmul.f32 %v459_v57, %v257_v56  ;;  %vm264_vm5 = vweird.f32 %v459_v57 }
 0x168   : > { %vm265_vm7 = vmor %vm263_vm6, %vm264_vm5 }
 0x169   : > { %v260_v59 = vsub.f32 1.0, %v259_v58 }
 0x16b   : > { %v261_v61 = vmul.f32 %v459_v57, %v260_v59 }
 0x16d   : > { %v262_v63 = vadd.f32 %v459_v57, %v261_v61 }
 0x16f   : > { %v266_v2 = vsel %vm265_vm7, %v459_v57, %v262_v63 }
 0x170   : > { %v271_v3 = vsel %vm268_vm8, %v270_v0, %v266_v2 }
 0x171   : > { %v274_v4 = vmul.f32 %v273_v1, %v271_v3 }
 0x173   : > { %277 = vperm.xlu1 %450, %v274_v4  }
 0x17b   : > { %288 = vperm.xlu1 %450, %v285_v5  }
 0x1e5   : > { %v278_v8 = vpop.permute.xlu1 %277 }
 0x1e6   : > { %v282_v10 = vperm.slane %v278_v8, %v281_v9 }
 0x1e8   : > { %v284_v12 = vmul.f32 %v282_v10, %v681_v22 }
 0x1ed   : > { %v289_v11 = vpop.permute.xlu1 %288 }
 0x1ee   : > { %v293_v13 = vperm.slane %v289_v11, %v281_v9 }
 0x1f0   : > { %v295_v14 = vadd.f32 %v293_v13, %v284_v12 }
 0x1f2   : > { %296 = vst [vmem:[%s188_s11] sm:$0xff] %v295_v14 }
 0x1f3   : > { %517 = shalt.err (!%p514_p4)
}
 0x1f4   : > { %402 = dma.vmem_to_hbm [thread:$0]  (%p632_p11), %s312_s17, 128, %s314_s19, %s298_s20  }
 0x1f5 PF: > { %s325_s26 = sand.u32 1, %s544_s12   ;;  %p739_p7 = scmp.ge.s32.totalorder %s556_s15, 2 }
 0x1f6   : > { %s326_s4 = scalar_lea.sflag [#allocation4], %s325_s26 }
 0x1f7   : > { %p409_p5 = pnand %p739_p7, %p636_p12 }
 0x1f9   : > { %p410_p8 = pneg %p409_p5 }
 0x1fb   : > { %539 = dma.done.wait (%p410_p8), %s326_s4, 128  }
 0x1fc   : > { %541 = vsyncadd (%p410_p8), %s326_s4, 4294967168  ;;  %p16_p10 = scmp.ge.s32.totalorder %s607_s18, 4   ;;  %s740_s12 = smov %s548_s13 }
 0x1fd   : > { %s741_s13 = smov %s552_s14  ;;  %s742_s14 = smov %s619_s21 }
 0x1fe   : > { %s743_s15 = smov %s607_s18  ;;  %18 = sbr.rel (!%p16_p10) target bundleno = 5 (0x5), region = 77 }
 0x203   :  { %332 = vsyncpa [#allocation3], 1 }
 0x204   :  { %334 = vsyncpa [#allocation3 + $0x1], 1 }
 0x205   :  { %335 = vsyncpa [#allocation4], 1 }
 0x206   :  { %337 = vsyncpa [#allocation4 + $0x1], 1 }

</bundles_post_ra>
